<compile_context>
chip_gen: v7x
topology: tpu7x:2x2x1
jax: 0.10.0
libtpu: 0.0.40
codegen_flags: <defaults>
</compile_context>

<pallas_src>
import math
import jax
import jax.numpy as jnp
from jax.experimental import pallas as pl
from jax.experimental.pallas import tpu as pltpu

EMBED_DIM = 32                 # embedding_dim
N_HEADS = 8                    # n_heads
HEAD_DIM = EMBED_DIM // N_HEADS
TANH_CLIP = 10.0               # tanh_clipping
NEG = -1e9                     # finite "masked" value (avoids -inf -> NaN)
LANES = 128

assert N_HEADS * HEAD_DIM == EMBED_DIM
assert 4 * EMBED_DIM == LANES  # [K | V | L | Cproj] fills exactly one 128-lane vreg


def _round_up(x, m):
    return ((x + m - 1) // m) * m


def _pick_tb(B, max_rows=512):
    """Largest batch block <= max_rows dividing B, preferring an even grid of
    >= 2 steps so dimension_semantics=('parallel', ...) can use both v7x TCs."""
    divisors = [t for t in range(1, B + 1) if B % t == 0 and t <= max_rows]
    even_multi = [t for t in divisors if (B // t) >= 2 and (B // t) % 2 == 0]
    multi = [t for t in divisors if (B // t) >= 2]
    if even_multi:
        return max(even_multi)
    if multi:
        return max(multi)
    return max(divisors)


# --------------------------------------------------------------------------
# Pallas kernels
# --------------------------------------------------------------------------
def _precompute_kernel(feat_ref, wall_ref, kvlc_ref, ctx_ref):
    """_precompute for one batch block of TB rows.

    feat_ref : (TB*Npad, D)   node embeddings (flattened, zero-padded rows)
    wall_ref : (D, 128)       [W_K^T | W_V^T | W_L^T/sqrt(D) | W_fixed^T/N]
    kvlc_ref : (TB*Npad, 128) bf16 output slab
    ctx_ref  : (TB, 1, D)     fixed.context_node_projected
    """
    D = EMBED_DIM
    TB = ctx_ref.shape[0]
    Npad = feat_ref.shape[0] // TB

    kvlc = jnp.dot(feat_ref[...], wall_ref[...],
                   preferred_element_type=jnp.float32)        # (TB*Npad, 128)
    kvlc_ref[...] = kvlc.astype(kvlc_ref.dtype)               # lane-dense bf16 store

    # fixed context = mean over real nodes of project_fixed_context(embeddings).
    # 1/N is folded into the Cproj weight columns and pad rows are zero, so a
    # plain row-sum per batch element is exact (no O(TB^2) averaging matrix).
    cproj = kvlc[:, 3 * D:4 * D]                              # (TB*Npad, D) f32
    ctx_ref[:, 0, :] = jnp.sum(cproj.reshape(TB, Npad, D), axis=1)


def _decode_step_kernel(ctx_ref, step_ref, mask_ref, kvlc_ref,
                        wstep_ref, hq_ref, hsel_ref, wout_ref, logp_ref):
    """One decode step (_get_log_p / _one_to_many_logits) for TB batch rows.

    The KVL slab / ctx / weights have step-invariant BlockSpecs, so across the
    inner grid axis (the decode-step axis) they stay resident in VMEM.
    """
    TB, Npad, _ = kvlc_ref.shape
    NP_OUT = logp_ref.shape[-1]

    slab = kvlc_ref[...]                     # (TB, Npad, 128) bf16 — NOT up-cast
    ctx128 = ctx_ref[:, 0, :]                # (TB, 128) f32, lanes >= D are zero
    step = step_ref[0, :, 0, :]              # (TB, D)   f32
    mask = mask_ref[0, :, 0, :]              # (TB, Npad) 1.0 == infeasible

    # query = fixed_context + project_step_context(step_ctx); lanes >= D stay 0
    q128 = ctx128 + jnp.dot(step, wstep_ref[...],
                            preferred_element_type=jnp.float32)     # (TB, 128)

    # per-head compatibility via block-diag head mask (1/sqrt(dh) folded in hq)
    qb = (q128[:, None, :] * hq_ref[...][None, :, :]).astype(slab.dtype)
    compat = jnp.einsum("bhc,bnc->bhn", qb, slab,
                        preferred_element_type=jnp.float32)         # (TB, H, Npad)
    compat = jnp.where(mask[:, None, :] > 0.5, NEG, compat)         # mask_inner

    cmax = jnp.max(compat, axis=-1, keepdims=True)
    e = jnp.exp(compat - cmax)
    attn = e * pl.reciprocal(jnp.sum(e, axis=-1, keepdims=True), approx=True)

    hvec = jnp.einsum("bhn,bnc->bhc", attn.astype(slab.dtype), slab,
                      preferred_element_type=jnp.float32)           # (TB, H, 128)
    heads128 = jnp.sum(hvec * hsel_ref[...][None, :, :], axis=1)    # V lanes only
    # project_out, shifted so the result lands in the logit-K lanes of the slab
    glimpse128 = jnp.dot(heads128, wout_ref[...],
                         preferred_element_type=jnp.float32)        # (TB, 128)

    logits = jnp.einsum("bqc,bnc->bqn", glimpse128[:, None, :].astype(slab.dtype),
                        slab, preferred_element_type=jnp.float32)[:, 0, :]
    logits = jnp.tanh(logits) * TANH_CLIP        # 1/sqrt(D) already folded into L
    logits = jnp.where(mask > 0.5, NEG, logits)                     # mask_logits

    lmax = jnp.max(logits, axis=-1, keepdims=True)
    lse = jnp.log(jnp.sum(jnp.exp(logits - lmax), axis=-1, keepdims=True)) + lmax
    logp = logits - lse                                             # (TB, Npad)

    if NP_OUT > Npad:                            # lane-dense 128-wide store
        logp = jnp.concatenate(
            [logp, jnp.full((TB, NP_OUT - Npad), NEG, jnp.float32)], axis=-1)
    logp_ref[0, :, 0, :] = logp


# --------------------------------------------------------------------------
# Pallas wrappers
# --------------------------------------------------------------------------
def precompute_pallas(feature, w_node, w_fixed, *, tb=None,
                      vmem_limit=48 * 1024 * 1024):
    """_precompute: returns (kvl slab (B, Npad, 128) bf16, fixed_ctx (B, 1, D))."""
    B, N, D = feature.shape
    Npad = _round_up(N, 16)                       # bf16 sublane alignment
    TB = tb if tb is not None else _pick_tb(B)
    nb = B // TB

    feat2d = jnp.pad(feature.astype(jnp.float32),
                     ((0, 0), (0, Npad - N), (0, 0))).reshape(B * Npad, D)
    # fused weight: [K | V | L/sqrt(D) | Cproj/N]  -> exactly 128 lanes
    w_all = jnp.concatenate(
        [w_node[:D, :].T,
         w_node[D:2 * D, :].T,
         w_node[2 * D:, :].T * (1.0 / math.sqrt(D)),
         w_fixed.T * (1.0 / N)], axis=1).astype(jnp.float32)         # (D, 128)

    grid_spec = pltpu.PrefetchScalarGridSpec(
        num_scalar_prefetch=0, grid=(nb,),
        in_specs=[
            pl.BlockSpec((TB * Npad, D), lambda b: (b, 0)),          # embeddings
            pl.BlockSpec((D, LANES), lambda b: (0, 0)),              # fused weight
        ],
        out_specs=[
            pl.BlockSpec((TB * Npad, LANES), lambda b: (b, 0)),      # KVL slab
            pl.BlockSpec((TB, 1, D), lambda b: (b, 0, 0)),           # fixed ctx
        ],
    )
    out_shape = (
        jax.ShapeDtypeStruct((B * Npad, LANES), jnp.bfloat16),
        jax.ShapeDtypeStruct((B, 1, D), jnp.float32),
    )
    kvlc2d, fixed_ctx = pl.pallas_call(
        _precompute_kernel, out_shape=out_shape, grid_spec=grid_spec,
        compiler_params=pltpu.CompilerParams(
            dimension_semantics=("parallel",), vmem_limit_bytes=vmem_limit),
    )(feat2d, w_all)
    return kvlc2d.reshape(B, Npad, LANES), fixed_ctx


def decode_steps_pallas(fixed_ctx, kvl_slab, step_ctx_seq, mask_seq,
                        w_step, w_out, *, tb=None, vmem_limit=48 * 1024 * 1024):
    """Fused multi-step _get_log_p: ONE pallas_call over grid (batch_block, step).

    step_ctx_seq : (S, B, D)  gathered current-node embeddings per step
    mask_seq     : (S, B, N)  1.0 == infeasible
    Returns log_p (S, B, N).
    """
    B, Npad, _ = kvl_slab.shape
    D, H = EMBED_DIM, N_HEADS
    S = step_ctx_seq.shape[0]
    N = mask_seq.shape[-1]
    TB = tb if tb is not None else _pick_tb(B)
    nb = B // TB
    NP_OUT = _round_up(Npad, LANES)

    ctx128 = jnp.pad(fixed_ctx.astype(jnp.float32),
                     ((0, 0), (0, 0), (0, LANES - D)))                # (B, 1, 128)
    steps4 = step_ctx_seq.astype(jnp.float32)[:, :, None, :]          # (S, B, 1, D)
    mask4 = jnp.pad(mask_seq.astype(jnp.float32),
                    ((0, 0), (0, 0), (0, Npad - N)),
                    constant_values=1.0)[:, :, None, :]                # (S, B, 1, Npad)

    # trace-time constants: padded step weight, scaled head masks, shifted W_out
    w_step128 = jnp.concatenate(
        [w_step.T, jnp.zeros((D, LANES - D), jnp.float32)], axis=1)    # (D, 128)
    lane = jnp.arange(LANES)
    head = jnp.arange(H)[:, None]
    hq = jnp.where((lane[None, :] < D) & (lane[None, :] // HEAD_DIM == head),
                   1.0 / math.sqrt(HEAD_DIM), 0.0).astype(jnp.float32)  # K lanes
    hsel = jnp.where((lane[None, :] >= D) & (lane[None, :] < 2 * D)
                     & ((lane[None, :] - D) // HEAD_DIM == head),
                     1.0, 0.0).astype(jnp.float32)                      # V lanes
    w_out_shift = jnp.zeros((LANES, LANES), jnp.float32)
    w_out_shift = w_out_shift.at[D:2 * D, 2 * D:3 * D].set(
        w_out.T.astype(jnp.float32))                                    # V -> L lanes

    grid_spec = pltpu.PrefetchScalarGridSpec(
        num_scalar_prefetch=0, grid=(nb, S),
        in_specs=[
            pl.BlockSpec((TB, 1, LANES), lambda b, s: (b, 0, 0)),       # ctx (resident)
            pl.BlockSpec((1, TB, 1, D), lambda b, s: (s, b, 0, 0)),     # step ctx
            pl.BlockSpec((1, TB, 1, Npad), lambda b, s: (s, b, 0, 0)),  # mask
            pl.BlockSpec((TB, Npad, LANES), lambda b, s: (b, 0, 0)),    # slab (resident)
            pl.BlockSpec((D, LANES), lambda b, s: (0, 0)),              # W_step padded
            pl.BlockSpec((H, LANES), lambda b, s: (0, 0)),              # head-Q mask
            pl.BlockSpec((H, LANES), lambda b, s: (0, 0)),              # head-V select
            pl.BlockSpec((LANES, LANES), lambda b, s: (0, 0)),          # shifted W_out
        ],
        out_specs=pl.BlockSpec((1, TB, 1, NP_OUT), lambda b, s: (s, b, 0, 0)),
    )
    log_p_pad = pl.pallas_call(
        _decode_step_kernel,
        out_shape=jax.ShapeDtypeStruct((S, B, 1, NP_OUT), jnp.float32),
        grid_spec=grid_spec,
        compiler_params=pltpu.CompilerParams(
            dimension_semantics=("parallel", "arbitrary"),
            vmem_limit_bytes=vmem_limit),
    )(ctx128, steps4, mask4, kvl_slab, w_step128, hq, hsel, w_out_shift)
    return log_p_pad[:, :, 0, :N]


# --------------------------------------------------------------------------
# Glue: parameters, PDP _init_embed, pure-JAX references
# --------------------------------------------------------------------------
def init_params(key):
    D = EMBED_DIM
    ks = jax.random.split(key, 10)

    def lin_w(k, out_dim, in_dim):
        bound = 1.0 / math.sqrt(in_dim)
        return jax.random.uniform(k, (out_dim, in_dim), jnp.float32, -bound, bound)

    def lin_b(k, out_dim, in_dim):
        bound = 1.0 / math.sqrt(in_dim)
        return jax.random.uniform(k, (out_dim,), jnp.float32, -bound, bound)

    return {
        "w_depot": lin_w(ks[0], D, 2), "b_depot": lin_b(ks[1], D, 2),
        "w_pick": lin_w(ks[2], D, 4), "b_pick": lin_b(ks[3], D, 4),
        "w_del": lin_w(ks[4], D, 2), "b_del": lin_b(ks[5], D, 2),
        "w_node": lin_w(ks[6], 3 * D, D),     # project_node_embeddings (no bias)
        "w_fixed": lin_w(ks[7], D, D),        # project_fixed_context   (no bias)
        "w_step": lin_w(ks[8], D, D),         # project_step_context    (no bias)
        "w_out": lin_w(ks[9], D, D),          # project_out             (no bias)
    }


def init_embed(params, depot, loc):
    """PDP _init_embed (plain-JAX glue; tiny linears + concat)."""
    n_loc = loc.shape[1]
    e_depot = depot @ params["w_depot"].T + params["b_depot"]
    feat_pick = jnp.concatenate([loc[:, : n_loc // 2, :],
                                 loc[:, n_loc // 2:, :]], axis=-1)
    feat_del = loc[:, n_loc // 2:, :]
    e_pick = feat_pick @ params["w_pick"].T + params["b_pick"]
    e_del = feat_del @ params["w_del"].T + params["b_del"]
    return jnp.concatenate([e_depot, e_pick, e_del], axis=1)          # (B, N, D)


def reference_precompute(feature, w_node, w_fixed):
    D = feature.shape[-1]
    kvl = feature @ w_node.T
    K, V, L = kvl[..., :D], kvl[..., D:2 * D], kvl[..., 2 * D:]
    fixed_ctx = feature.mean(1) @ w_fixed.T
    return K, V, L, fixed_ctx


def reference_decode_from_cache(fixed_ctx, step_ctx, K, V, L, mask_b, w_step, w_out):
    """Pure-JAX replica of _get_log_p given the cached fixed data."""
    B, N, D = K.shape
    H, dh = N_HEADS, HEAD_DIM
    query = fixed_ctx + step_ctx @ w_step.T
    qh = query.reshape(B, H, dh)
    Kh = K.reshape(B, N, H, dh).transpose(0, 2, 1, 3)
    Vh = V.reshape(B, N, H, dh).transpose(0, 2, 1, 3)
    compat = jnp.einsum("bhd,bhnd->bhn", qh, Kh) / math.sqrt(dh)
    compat = jnp.where(mask_b[:, None, :], -jnp.inf, compat)
    attn = jax.nn.softmax(compat, axis=-1)
    heads = jnp.einsum("bhn,bhnd->bhd", attn, Vh)
    glimpse = heads.reshape(B, D) @ w_out.T
    logits = jnp.einsum("bd,bnd->bn", glimpse, L) / math.sqrt(D)
    logits = jnp.tanh(logits) * TANH_CLIP
    logits = jnp.where(mask_b, -jnp.inf, logits)
    log_p = jax.nn.log_softmax(logits, axis=-1)
    return log_p, glimpse


# --------------------------------------------------------------------------
if __name__ == "__main__":
    key = jax.random.PRNGKey(0)
    B, n_loc = 2, 16
    N = 1 + n_loc
    D = EMBED_DIM
    S = 4                                            # decode steps demonstrated

    k_inputs, k_params = jax.random.split(key)
    kd, kl, km = jax.random.split(k_inputs, 3)
    depot = jax.random.uniform(kd, (B, 1, 2), jnp.float32)
    loc = jax.random.uniform(kl, (B, n_loc, 2), jnp.float32)
    edge_matrix = jax.random.uniform(km, (B, N, N), jnp.float32)      # GCN input (TODO)

    params = init_params(k_params)

    # --- encoder path ---
    node_embedding = init_embed(params, depot, loc)                   # (B, N, D)
    # TODO(synk): GraphAttentionEncoder / ResidualGatedGCNModel not in the
    # provided source; treated as identity passthrough.
    feature = node_embedding

    # --- _precompute in Pallas: lane-dense bf16 [K|V|L|Cproj] slab + fixed ctx ---
    kvl_slab, fixed_ctx = precompute_pallas(feature, params["w_node"],
                                            params["w_fixed"])

    # --- fused multi-step decode (_get_log_p per step, slab VMEM-resident) ---
    # TODO(synk): problem.make_state / _select_node / get_costs are not in the
    # provided source; a fixed node sequence + visited masks stand in here.
    step_nodes = jnp.array([[1, 3], [5, 11], [13, 7], [2, 15]], dtype=jnp.int32)  # (S,B)
    node_ids = jnp.arange(N)
    visited = (node_ids[None, None, :] == step_nodes[:, :, None]).astype(jnp.float32)
    visited = (jnp.cumsum(visited, axis=0) > 0).astype(jnp.float32)   # visited <= step s
    depot_mask = (node_ids == 0).astype(jnp.float32)[None, None, :]
    mask_seq = jnp.maximum(visited, depot_mask)                       # (S, B, N)
    step_ctx_seq = feature[jnp.arange(B)[None, :], step_nodes, :]     # (S, B, D)

    log_p = decode_steps_pallas(fixed_ctx, kvl_slab, step_ctx_seq, mask_seq,
                                params["w_step"], params["w_out"])
    jax.block_until_ready((kvl_slab, fixed_ctx, log_p))

    # --- verify against pure-JAX references of the PyTorch math ---
    Kr, Vr, Lr, ctx_r = reference_precompute(feature, params["w_node"],
                                             params["w_fixed"])
    assert bool(jnp.allclose(fixed_ctx[:, 0, :], ctx_r, atol=2e-3, rtol=2e-3))

    slab_f32 = kvl_slab[:, :N, :].astype(jnp.float32)
    ref_slab = jnp.concatenate([Kr, Vr, Lr * (1.0 / math.sqrt(D))], axis=-1)
    assert bool(jnp.allclose(slab_f32[..., :3 * D], ref_slab, atol=3e-2, rtol=3e-2))

    # decode reference consumes the same bf16-quantized K/V/L the kernel reads
    K_q = slab_f32[..., :D]
    V_q = slab_f32[..., D:2 * D]
    L_q = slab_f32[..., 2 * D:3 * D] * math.sqrt(D)
    max_err = 0.0
    for s in range(S):
        ref_lp, _ = reference_decode_from_cache(
            ctx_r, step_ctx_seq[s], K_q, V_q, L_q, mask_seq[s] > 0.5,
            params["w_step"], params["w_out"])
        feasible = mask_seq[s] < 0.5
        err = jnp.where(feasible, jnp.abs(log_p[s] - ref_lp), 0.0)
        max_err = max(max_err, float(jnp.max(err)))
        assert bool(jnp.all(jnp.where(feasible, jnp.float32(NEG), log_p[s]) < -1e6))
    assert max_err < 1e-1, f"log_p max err {max_err}"

    print("KERNEL_OK")
</pallas_src>

<mosaic_0001>
module attributes {stable_mosaic.version = 11 : i64} {
  func.func @_precompute_kernel(%arg0: i32, %arg1: memref<32x32xf32, #tpu.memory_space<vmem>>, %arg2: memref<32x128xf32, #tpu.memory_space<vmem>>, %arg3: memref<32x128xbf16, #tpu.memory_space<vmem>>, %arg4: memref<1x1x32xf32, #tpu.memory_space<vmem>>) attributes {dimension_semantics = [#tpu.dimension_semantics<parallel>], iteration_bounds = array<i64: 2>, scalar_prefetch = 0 : i64, scratch_operands = 0 : i64, tpu.core_type = #tpu.core_type<tc>, window_params = [{transform_indices = @transform_0, window_bounds = array<i64: 32, 32>}, {pipeline_mode = #tpu.pipeline_mode<synchronous>, transform_indices = @transform_1, window_bounds = array<i64: 32, 128>}, {transform_indices = @transform_2, window_bounds = array<i64: 32, 128>}, {transform_indices = @transform_3, window_bounds = array<i64: 1, 1, 32>}]} {
    %c0 = arith.constant 0 : index
    %c0_0 = arith.constant 0 : index
    %0 = vector.load %arg1[%c0, %c0_0] : memref<32x32xf32, #tpu.memory_space<vmem>>, vector<32x32xf32>
    %c0_1 = arith.constant 0 : index
    %c0_2 = arith.constant 0 : index
    %1 = vector.load %arg2[%c0_1, %c0_2] : memref<32x128xf32, #tpu.memory_space<vmem>>, vector<32x128xf32>
    %cst = arith.constant dense<0.000000e+00> : vector<32x128xf32>
    %2 = tpu.matmul %0, %1, %cst {dimension_numbers = #tpu.dot_dimension_numbers<[1], [0], [0], [1], [0, 0, 1, 1], [], []>} : vector<32x32xf32>, vector<32x128xf32>, vector<32x128xf32> -> vector<32x128xf32>
    %3 = arith.truncf %2 : vector<32x128xf32> to vector<32x128xbf16>
    %c0_3 = arith.constant 0 : index
    %c0_4 = arith.constant 0 : index
    %4 = vector.load %arg3[%c0_3, %c0_4] : memref<32x128xbf16, #tpu.memory_space<vmem>>, vector<32x128xbf16>
    tpu.vector_store %arg3[%c0_3, %c0_4], %3 {strides = array<i32>} : memref<32x128xbf16, #tpu.memory_space<vmem>>, vector<32x128xbf16>,
    %5 = vector.extract_strided_slice %2 {offsets = [0, 96], sizes = [32, 32], strides = [1, 1]} : vector<32x128xf32> to vector<32x32xf32>
    %6 = vector.shape_cast %5 : vector<32x32xf32> to vector<1x32x32xf32>
    %cst_5 = arith.constant dense<0.000000e+00> : vector<1x32xf32>
    %7 = vector.multi_reduction <add>, %6, %cst_5 [1] : vector<1x32x32xf32> to vector<1x32xf32>
    %c0_6 = arith.constant 0 : index
    %c0_7 = arith.constant 0 : index
    %c0_8 = arith.constant 0 : index
    %8 = vector.load %arg4[%c0_6, %c0_7, %c0_8] : memref<1x1x32xf32, #tpu.memory_space<vmem>>, vector<1x1x32xf32>
    %9 = vector.shape_cast %8 : vector<1x1x32xf32> to vector<1x32xf32>
    %10 = vector.shape_cast %7 : vector<1x32xf32> to vector<1x1x32xf32>
    tpu.vector_store %arg4[%c0_6, %c0_7, %c0_8], %10 {strides = array<i32>} : memref<1x1x32xf32, #tpu.memory_space<vmem>>, vector<1x1x32xf32>,
    return
  }
  func.func @transform_0(%arg0: i32) -> (i32, i32) {
    %c0_i32 = arith.constant 0 : i32
    %c0_i32_0 = arith.constant 0 : i32
    return %arg0, %c0_i32 : i32, i32
  }
  func.func @transform_1(%arg0: i32) -> (i32, i32) {
    %c0_i32 = arith.constant 0 : i32
    %c0_i32_0 = arith.constant 0 : i32
    %c0_i32_1 = arith.constant 0 : i32
    return %c0_i32, %c0_i32_0 : i32, i32
  }
  func.func @transform_2(%arg0: i32) -> (i32, i32) {
    %c0_i32 = arith.constant 0 : i32
    %c0_i32_0 = arith.constant 0 : i32
    return %arg0, %c0_i32 : i32, i32
  }
  func.func @transform_3(%arg0: i32) -> (i32, i32, i32) {
    %c0_i32 = arith.constant 0 : i32
    %c0_i32_0 = arith.constant 0 : i32
    %c0_i32_1 = arith.constant 0 : i32
    return %arg0, %c0_i32, %c0_i32_0 : i32, i32, i32
  }
}

</mosaic_0001>

<bundles_post_ra>
// kernel: tpu_custom_call.1
= control target key start
LH: loop header
LB: loop body
LE: loop exit
PB: predicated region body
PF: predicated region fallthrough
CT: control target
= control target key end

     0   :  { %9 = vsyncpa [#allocation3], 0  ;;  %s840_s0 = inlined_call_operand.vmem [shape: f32[64,32], index: 0, kind: input, shape index: {}]   ;;  %s841_s1 = inlined_call_operand.vmem [shape: f32[32,128], index: 1, kind: input, shape index: {}]   ;;  %s842_s2 = inlined_call_operand.hbm [shape: bf16[64,128], index: 2, kind: output, shape index: {0}]   ;;  %s843_s3 = inlined_call_operand.hbm [shape: f32[2,1,32], index: 3, kind: output, shape index: {1}]  }
   0x1   :  { %11 = vsyncpa [#allocation3 + $0x1], 0 }
   0x2   :  { %12 = vsyncpa [#allocation5], 0 }
   0x3   :  { %14 = vsyncpa [#allocation5 + $0x1], 0  ;;  %s688_s12 = smov 0   ;;  %s690_s13 = smov 0  }
   0x4   :  { %s692_s14 = smov 0   ;;  %s694_s15 = smov 0  }
   0x5 LB: > { %s709_s16 = sadd.s32 4294967295, %s661_s15   ;;  %s449_s17 = sadd.s32 4294967294, %s661_s15   ;;  %s661_s15 = sphi %s694_s15, %s849_s15   ;;  %s657_s14 = sphi %s692_s14, %s848_s14   ;;  %s653_s13 = sphi %s690_s13, %s847_s13   ;;  %s649_s12 = sphi %s688_s12, %s846_s12  }
   0x6   : > { %s713_s18 = sadd.s32 1, %s661_s15   ;;  %s74_s19 = sadd.s32 1, %s657_s14 }
   0x7   : > { %s71_s20 = ssub.s32 %s661_s15, %s713_s18  ;;  %p84_p0 = scmp.ne.s32.totalorder %s657_s14, %s653_s13 }
   0x8   : > { %p72_p1 = scmp.eq.s32.totalorder %s71_s20, 0  ;;  %p85_p2 = scmp.eq.s32.totalorder %s709_s16, 1 }
   0x9   : > { %p90_p3 = scmp.ne.s32.totalorder %s653_s13, %s649_s12  ;;  %p91_p4 = scmp.eq.s32.totalorder %s449_s17, 1 }
   0xa   : > { %s724_s21 = scalar_select %p72_p1, %s657_s14, %s74_s19  }
   0xb   : > { %p726_p5 = por %p85_p2, %p84_p0  ;;  %p730_p6 = por %p91_p4, %p90_p3 }
   0xc   : > { %p452_p7 = scmp.ge.s32.totalorder %s661_s15, 1  ;;  %p147_p8 = scmp.lt.s32.totalorder %s661_s15, 3 }
   0xe   : > { %p148_p9 = pnand %p452_p7, %p147_p8 }
   0xf   : > { %v186_v0 = vld [vmem:[%s841_s1] sm:$0xff] (!%p148_p9)  ;;  %v187_v1 = vld [vmem:[%s841_s1 + $0x8] sm:$0xff] (!%p148_p9)  ;;  %v188_v2 = vld [vmem:[%s841_s1 + $0x10] sm:$0xff] (!%p148_p9)  ;;  %s454_s30 = sshll.u32 (!%p148_p9), %s709_s16, 2  ;;  %vm190_vm0 = vcmask (!%p148_p9), 261120   ;;  %s753_s10 = sand.u32 (!%p148_p9), 1, %s653_s13  }
  0x10   : > { %151 = sbr.rel (%p148_p9) target bundleno = 400 (0x190), region = 28  ;;  %v508_v3 = vpack.c.bf16 (!%p148_p9), %v187_v1, %v186_v0  ;;  %v189_v4 = vld [vmem:[%s841_s1 + $0x18] sm:$0xff] (!%p148_p9)  ;;  %p176_p10 = scmp.lt.s32.totalorder (!%p148_p9), %s454_s30, 7  ;;  %vm308_vm1 = vcmask (!%p148_p9), 1048320  }
  0x11   : > { %v512_v5 = vpack.c.bf16 (!%p148_p9), %v189_v4, %v188_v2  ;;  %s453_s11 = sshll.u32 (!%p148_p9), %s753_s10, 4  ;;  %s474_s20 = sshll.u32 (!%p148_p9), %s709_s16, 8 }
  0x12   : > { %509 = vmatprep.subr.bf16.mxu0 (!%p148_p9), %v508_v3  ;;  %516 = vmatprep.subr.bf16.mxu1 (!%p148_p9), %v508_v3  ;;  %s168_s17 = scalar_lea.vmem (!%p148_p9), [#allocation2], %s453_s11  ;;  %s766_s26 = scalar_lea.hbm (!%p148_p9), %s842_s2, %s474_s20 }
  0x13   : > { %511 = vmatpush3.bf16.msra.mxu0 (!%p148_p9), %v508_v3  ;;  %518 = vmatpush3.bf16.msra.mxu1 (!%p148_p9), %v508_v3  ;;  %s346_s19 = sshll.u32 (!%p148_p9), %s168_s17, 4  ;;  %s329_s27 = scalar_lea.sflag (!%p148_p9), [#allocation3], %s753_s10  ;;  %s760_s19 = int_to_ptr.vmem [resolvable:$true] %s346_s19 }
  0x14   : > { %513 = vmatprep.subr.bf16.mxu0 (!%p148_p9), %v512_v5  ;;  %517 = vmatprep.subr.bf16.mxu1 (!%p148_p9), %v512_v5  ;;  %s567_s28 = scalar_lea.vmem (!%p148_p9), %s760_s19, 256  ;;  %s663_s29 = smov (!%p148_p9), [#allocation2]  }
  0x15   : > { %p568_p11 = scmp.ne.s32.totalorder (!%p148_p9), %s760_s19, %s567_s28 }
  0x17   : > { %s851_s30 = smov (!%p176_p10, %s454_s30), 7  ;;  %515 = vmatpush3.bf16.msra.mxu0 %v512_v5  ;;  %519 = vmatpush3.bf16.msra.mxu1 %v512_v5  ;;  %p569_p12 = pnand %p568_p11, %p726_p5 }
  0x18   : > { %s455_s6 = sshll.u32 %s851_s30, 3  ;;  %s571_s30 = sshll.u32 %s663_s29, 4  ;;  %s572_s30 = int_to_ptr.vmem [resolvable:$false] %s571_s30 }
  0x19   : > { %s179_s9 = scalar_lea.vmem %s840_s0, %s455_s6  ;;  %p570_p13 = pneg %p569_p12 }
  0x1a   : > { %v182_v6 = vld [vmem:[%s179_s9] sm:$0xff]  ;;  %v184_v7 = vld [vmem:[%s179_s9 + $0x10] sm:$0xff]  ;;  %v183_v8 = vld [vmem:[%s179_s9 + $0x8] sm:$0xff]  ;;  %s573_s4 = scalar_lea.vmem %s572_s30, 512  ;;  %p574_p0 = scmp.lt.s32.totalorder %s760_s19, %s572_s30 }
  0x1b   : > { %v185_v9 = vld [vmem:[%s179_s9 + $0x18] sm:$0xff]  ;;  %502 = vmatprep.mubr.msk.f32.mxu0 %vm190_vm0, %v182_v6  ;;  %505 = vmatprep.mubr.msk.f32.mxu1 %vm190_vm0, %v184_v7  ;;  %p575_p1 = scmp.lt.s32.totalorder %s573_s4, %s567_s28 }
  0x1c   : > { %503 = vmatmul.mubr.msk.f32.vlgmr.msra.gmra.mrb[0].mxu0 %vm190_vm0, %v183_v8  ;;  %506 = vmatmul.mubr.msk.f32.vlgmr.msra.gmra.mrb[0].mxu1 %vm190_vm0, %v185_v9 }
  0x1d   : > { %p576_p2 = por %p575_p1, %p574_p0 }
  0x1f   : > { %p577_p3 = pnand %p576_p2, %p570_p13 }
  0xef   : > { %v504_v10 = vpop.f32.mrb[0].mxu0  ;;  %v507_v11 = vpop.f32.mrb[0].mxu1 }
  0xf0   : > { %v310_v12 = vsel %vm308_vm1, %v504_v10, 0.0  ;;  %v269_v13 = vpop.f32.mrb[1].mxu0  ;;  %v279_v14 = vpop.f32.mrb[1].mxu1  ;;  %v314_v21 = vsel %vm308_vm1, %v507_v11, 0.0 }
  0xf1   : > { %v478_v15 = vpack.c.bf16 %v504_v10, %v269_v13  ;;  %v309_v16 = vsel %vm308_vm1, %v269_v13, 0.0  ;;  %v483_v17 = vpack.c.bf16 %v507_v11, %v279_v14  ;;  %v312_v18 = vsel %vm308_vm1, %v279_v14, 0.0 }
  0xf2   : > { %v311_v19 = vadd.f32 %v310_v12, %v309_v16 }
  0xf3   : > { %479 = vst [vmem:[%s168_s17] sm:$0xff] %v478_v15   ;;  %485 = vst [vmem:[%s168_s17 + $0x8] sm:$0xff] %v483_v17  }
  0xf4   : > { %v313_v20 = vadd.f32 %v312_v18, %v311_v19 }
  0xf6   : > { %v315_v22 = vadd.f32 %v314_v21, %v313_v20 }
  0xf8   : > { %v316_v23 = vrot.slane %v315_v22, 4 }
  0xf9   : > { %580 = shalt.err (!%p577_p3)
}
  0xfa   : > { %s581_s5 = scalar_lea.hbm %s766_s26, 256  ;;  %s585_s8 = scalar_lea.hbm %s842_s2, 512 }
  0xfb   : > { %p582_p4 = scmp.ne.s32.totalorder %s766_s26, %s581_s5  ;;  %p586_p9 = scmp.lt.u32.totalorder %s766_s26, %s842_s2 }
  0xfc   : > { %p587_p10 = scmp.lt.u32.totalorder %s585_s8, %s581_s5  ;;  %p589_p12 = scmp.lt.u32.totalorder %s581_s5, %s766_s26 }
  0xfd   : > { %p583_p7 = pnand %p582_p4, %p726_p5 }
  0xfe   : > { %p588_p11 = por %p587_p10, %p586_p9 }
  0xff   : > { %p584_p8 = pneg %p583_p7 }
 0x100   : > { %p590_p13 = por %p589_p12, %p588_p11 }
 0x102   : > { %p591_p0 = pnand %p590_p13, %p584_p8 }
 0x104   : > { %594 = shalt.err (!%p591_p0)
}
 0x105   : > { %s664_s17 = smov 64   ;;  %s665_s20 = smov 4   ;;  %v317_v24 = vadd.f32 %v316_v23, %v315_v22  ;;  %vm326_vm2 = vcmask 253952  }
 0x106   : > { %520 = dma.vmem_to_hbm [thread:$0]  (%p726_p5), %s760_s19, 256, %s766_s26, %s329_s27, %s664_s17, %s664_s17, %s665_s20  }
 0x107   : > { %v318_v25 = vrot.slane %v317_v24, 2  ;;  %s666_s24 = smov 32   ;;  %s467_s25 = sshll.u32 %s709_s16, 4 }
 0x108   : > { %s174_s28 = scalar_lea.vmem [#allocation4], %s753_s10  ;;  %s797_s5 = scalar_lea.hbm %s843_s3, %s467_s25 }
 0x109   : > { %v319_v26 = vadd.f32 %v318_v25, %v317_v24  ;;  %s362_s29 = sshll.u32 %s174_s28, 4  ;;  %s334_s19 = scalar_lea.sflag [#allocation5], %s753_s10  ;;  %s799_s29 = int_to_ptr.vmem [resolvable:$true] %s362_s29 }
 0x10a   : > { %s595_s26 = scalar_lea.vmem %s799_s29, 16  ;;  %s667_s16 = smov [#allocation4]  }
 0x10b   : > { %v320_v27 = vrot.slane %v319_v26, 1  ;;  %p596_p1 = scmp.ne.s32.totalorder %s799_s29, %s595_s26  ;;  %s599_s27 = sshll.u32 %s667_s16, 4  ;;  %s600_s27 = int_to_ptr.vmem [resolvable:$false] %s599_s27 }
 0x10c   : > { %s601_s6 = scalar_lea.vmem %s600_s27, 32  ;;  %p602_p4 = scmp.lt.s32.totalorder %s799_s29, %s600_s27 }
 0x10d   : > { %v321_v28 = vadd.f32 %v320_v27, %v319_v26  ;;  %p597_p2 = pnand %p596_p1, %p726_p5  ;;  %p603_p7 = scmp.lt.s32.totalorder %s601_s6, %s595_s26 }
 0x10f   : > { %323 = vrot.lane.b32.xlu0 %v321_v28, %s666_s24  ;;  %p598_p3 = pneg %p597_p2  ;;  %p604_p8 = por %p603_p7, %p602_p4 }
 0x111   : > { %p605_p9 = pnand %p604_p8, %p598_p3 }
 0x181   : > { %v324_v29 = vpop.permute.xlu0 %323 }
 0x182   : > { %327 = vst.msk [vmem:[%s174_s28] sm:$0x1] %vm326_vm2, %v324_v29 }
 0x183   : > { %608 = shalt.err (!%p605_p9)
}
 0x184   : > { %s609_s10 = scalar_lea.hbm %s797_s5, 16  ;;  %s613_s9 = scalar_lea.hbm %s843_s3, 32 }
 0x185   : > { %p610_p10 = scmp.ne.s32.totalorder %s797_s5, %s609_s10  ;;  %p614_p13 = scmp.lt.u32.totalorder %s797_s5, %s843_s3 }
 0x186   : > { %p615_p0 = scmp.lt.u32.totalorder %s613_s9, %s609_s10  ;;  %p617_p2 = scmp.lt.u32.totalorder %s609_s10, %s797_s5 }
 0x187   : > { %p611_p11 = pnand %p610_p10, %p726_p5 }
 0x188   : > { %p616_p1 = por %p615_p0, %p614_p13 }
 0x189   : > { %p612_p12 = pneg %p611_p11 }
 0x18a   : > { %p618_p3 = por %p617_p2, %p616_p1 }
 0x18c   : > { %p619_p4 = pnand %p618_p3, %p612_p12 }
 0x18e   : > { %622 = shalt.err (!%p619_p4)
}
 0x18f   : > { %521 = dma.vmem_to_hbm [thread:$0]  (%p726_p5), %s799_s29, 16, %s797_s5, %s334_s19  }
 0x190 PF: > { %p531_p7 = scmp.ge.s32.totalorder %s661_s15, 2  ;;  %s374_s20 = sand.u32 1, %s649_s12  }
 0x191   : > { %s375_s24 = scalar_lea.sflag [#allocation3], %s374_s20 }
 0x192   : > { %p525_p8 = pnand %p531_p7, %p730_p6 }
 0x194   : > { %640 = dma.done.wait (!%p525_p8), %s375_s24, 256  }
 0x195   : > { %642 = vsyncadd (!%p525_p8), %s375_s24, 4294967040  ;;  %s384_s25 = scalar_lea.sflag [#allocation5], %s374_s20 }
 0x196   : > { %644 = dma.done.wait (!%p525_p8), %s384_s25, 16  }
 0x197   : > { %646 = vsyncadd (!%p525_p8), %s384_s25, 4294967280  ;;  %p17_p5 = scmp.ge.s32.totalorder %s713_s18, 4   ;;  %s846_s12 = smov %s653_s13 }
 0x198   : > { %s847_s13 = smov %s657_s14  ;;  %s848_s14 = smov %s724_s21 }
 0x199   : > { %s849_s15 = smov %s713_s18  ;;  %19 = sbr.rel (!%p17_p5) target bundleno = 5 (0x5), region = 80 }
 0x1a0   :  { %388 = vsyncpa [#allocation3], 1 }
 0x1a1   :  { %390 = vsyncpa [#allocation3 + $0x1], 1 }
 0x1a2   :  { %391 = vsyncpa [#allocation5], 1 }
 0x1a3   :  { %393 = vsyncpa [#allocation5 + $0x1], 1 }

</bundles_post_ra>
